<compile_context>
chip_gen: v7x
topology: tpu7x:2x2x1
jax: 0.10.0
libtpu: 0.0.40
codegen_flags: <defaults>
</compile_context>

<pallas_src>
import jax
import jax.numpy as jnp
from jax.experimental import pallas as pl
from jax.experimental.pallas import tpu as pltpu

BN_EPS = 1e-5


def _round_up(n, m):
    return ((n + m - 1) // m) * m


def _round_feature(n):
    # 128-lane alignment for small dims; 256 alignment above that so one tile
    # fills a full v6e/v7x 256x256 MXU pass (v5e's 128x128 MXUs match 128).
    return 128 if n <= 128 else _round_up(n, 256)


def _pad_to(a, shape):
    pads = [(0, t - s) for s, t in zip(a.shape, shape)]
    return jnp.pad(a, pads)


def _fused_heads_kernel(x_ref, w1_ref, gamma_ref, beta_ref, w2_ref, b2_ref,
                        out_ref):
    """One grid step == one ProjectionHead over its full (B, D) input.

    Refs are 2-D: the head axis is pl.Squeezed() in every BlockSpec.
    Matmul inputs are bf16; accumulation and BN statistics are f32.
    """
    x = x_ref[...]                                                # (B, Dp) bf16

    # Linear 1 (bias-free: b1 cancels exactly under batch-stat BatchNorm).
    h = jnp.dot(x, w1_ref[...], preferred_element_type=jnp.float32)  # (B,Hp) f32

    # BatchNorm1d training-mode forward (biased batch variance, like PyTorch).
    mean = jnp.mean(h, axis=0, keepdims=True)
    hc = h - mean
    var = jnp.mean(hc * hc, axis=0, keepdims=True)
    scale = gamma_ref[...] * jax.lax.rsqrt(var + BN_EPS)          # rsqrt -> EUP
    h = hc * scale + beta_ref[...]

    # ReLU, then back to bf16 for the second MXU matmul.
    h = jnp.maximum(h, 0.0).astype(jnp.bfloat16)

    # Linear 2 (f32 accumulate + f32 bias); output tile is lane-dense (Pp=128k).
    out = jnp.dot(h, w2_ref[...], preferred_element_type=jnp.float32) + b2_ref[...]
    out_ref[...] = out.astype(out_ref.dtype)


def prepare_params(head_params):
    """One-time padding / stacking of per-head parameters into kernel layout.

    Call once and reuse: the returned stacks live in HBM in the exact layout
    the kernel consumes, so per-forward cost is just the pallas_call.
    Zero padding of weight rows/cols, gamma, beta and b2 keeps the math exact.
    b1 is accepted but dropped: it cancels under batch-stat BatchNorm.
    """
    n = len(head_params)
    in_dims = [p["w1"].shape[0] for p in head_params]
    hid_dims = [p["w1"].shape[1] for p in head_params]
    out_dims = [p["w2"].shape[1] for p in head_params]
    Dp = max(_round_feature(d) for d in in_dims)
    Hp = max(_round_feature(h) for h in hid_dims)
    Pp = max(_round_feature(o) for o in out_dims)

    w1_l, g_l, bt_l, w2_l, b2_l = [], [], [], [], []
    for p in head_params:
        w1_l.append(_pad_to(p["w1"].astype(jnp.bfloat16), (Dp, Hp)))
        g_l.append(_pad_to(p["gamma"].astype(jnp.float32), (1, Hp)))
        bt_l.append(_pad_to(p["beta"].astype(jnp.float32), (1, Hp)))
        w2_l.append(_pad_to(p["w2"].astype(jnp.bfloat16), (Hp, Pp)))
        b2_l.append(_pad_to(p["b2"].astype(jnp.float32), (1, Pp)))

    return dict(
        n=n, Dp=Dp, Hp=Hp, Pp=Pp, in_dims=in_dims, out_dims=out_dims,
        w1=jnp.stack(w1_l), gamma=jnp.stack(g_l), beta=jnp.stack(bt_l),
        w2=jnp.stack(w2_l), b2=jnp.stack(b2_l),
    )


def fused_projection_heads(xs, prepared):
    """Run the N independent ProjectionHeads in one pallas_call.

    xs: list of (B, D_i) inputs (same B); prepared: output of prepare_params.
    Returns list of (B, P_i) float32 projections.
    """
    n, Dp, Hp, Pp = prepared["n"], prepared["Dp"], prepared["Hp"], prepared["Pp"]
    assert len(xs) == n
    B = xs[0].shape[0]
    assert all(x.shape[0] == B for x in xs)
    # PyTorch BatchNorm1d rejects batch==1 in training mode (stats undefined).
    assert B > 1, "ProjectionHead (training-mode BatchNorm) requires batch > 1"

    # Activations: pad each head's x to the common lane width and stack.
    # TODO(synk): at production scale pre-pad / pre-stack x on the producer
    # side (or fuse the pad into the upstream op) so this copy disappears.
    x_st = jnp.stack(
        [_pad_to(x.astype(jnp.bfloat16), (B, Dp)) for x in xs])   # (n, B, Dp)

    cost = pl.CostEstimate(
        flops=2 * n * B * (Dp * Hp + Hp * Pp),
        transcendentals=n * Hp,                  # rsqrt per hidden feature
        bytes_accessed=(2 * (x_st.size + prepared["w1"].size + prepared["w2"].size)
                        + 4 * (prepared["gamma"].size + prepared["beta"].size
                               + prepared["b2"].size + n * B * Pp)),
    )

    out = pl.pallas_call(
        _fused_heads_kernel,
        out_shape=jax.ShapeDtypeStruct((n, B, Pp), jnp.float32),
        grid_spec=pltpu.PrefetchScalarGridSpec(
            num_scalar_prefetch=0,
            grid=(n,),
            in_specs=[
                pl.BlockSpec((pl.Squeezed(), B, Dp), lambda h: (h, 0, 0)),
                pl.BlockSpec((pl.Squeezed(), Dp, Hp), lambda h: (h, 0, 0)),
                pl.BlockSpec((pl.Squeezed(), 1, Hp), lambda h: (h, 0, 0)),
                pl.BlockSpec((pl.Squeezed(), 1, Hp), lambda h: (h, 0, 0)),
                pl.BlockSpec((pl.Squeezed(), Hp, Pp), lambda h: (h, 0, 0)),
                pl.BlockSpec((pl.Squeezed(), 1, Pp), lambda h: (h, 0, 0)),
            ],
            out_specs=pl.BlockSpec((pl.Squeezed(), B, Pp), lambda h: (h, 0, 0)),
        ),
        compiler_params=pltpu.CompilerParams(
            dimension_semantics=("parallel",),   # heads shard across TCs (v7x)
            vmem_limit_bytes=32 * 1024 * 1024),
        cost_estimate=cost,
    )(x_st, prepared["w1"], prepared["gamma"], prepared["beta"],
      prepared["w2"], prepared["b2"])

    return [out[i, :, :prepared["out_dims"][i]] for i in range(n)]


def contrastive_model_forward(prepared, protein_features, molecule_features):
    protein_proj, molecule_proj = fused_projection_heads(
        [protein_features, molecule_features], prepared)
    return protein_proj, molecule_proj


def init_projection_head_params(key, input_dim, output_dim, hidden_dim=None):
    """Deterministic synthetic params (shapes match nn.Linear / BatchNorm1d)."""
    if hidden_dim is None:
        hidden_dim = input_dim
    k1, k2, k3, k4 = jax.random.split(key, 4)
    scale1 = 1.0 / jnp.sqrt(input_dim)
    scale2 = 1.0 / jnp.sqrt(hidden_dim)
    return dict(
        w1=jax.random.normal(k1, (input_dim, hidden_dim), jnp.float32) * scale1,
        b1=jax.random.normal(k2, (1, hidden_dim), jnp.float32) * scale1,
        gamma=jnp.ones((1, hidden_dim), jnp.float32),   # BatchNorm1d weight
        beta=jnp.zeros((1, hidden_dim), jnp.float32),   # BatchNorm1d bias
        w2=jax.random.normal(k3, (hidden_dim, output_dim), jnp.float32) * scale2,
        b2=jax.random.normal(k4, (1, output_dim), jnp.float32) * scale2,
    )


def _projection_head_ref(x, p):
    """Pure-JAX f32 reference matching PyTorch forward (b1 included: BN cancels)."""
    h = x @ p["w1"] + p["b1"]
    mean = jnp.mean(h, axis=0, keepdims=True)
    var = jnp.mean((h - mean) ** 2, axis=0, keepdims=True)
    h = (h - mean) / jnp.sqrt(var + BN_EPS)
    h = h * p["gamma"] + p["beta"]
    h = jnp.maximum(h, 0.0)
    return h @ p["w2"] + p["b2"]


if __name__ == "__main__":
    # Small shapes consistent with the module (protein_dim, molecule_dim, proj_dim).
    batch = 8            # BN batch stats need batch > 1; 8 fills a sublane group
    protein_dim = 32
    molecule_dim = 64
    projection_dim = 16

    root = jax.random.PRNGKey(0)
    k_prot_p, k_mol_p, k_prot_x, k_mol_x = jax.random.split(root, 4)

    params = {
        "protein": init_projection_head_params(k_prot_p, protein_dim, projection_dim),
        "molecule": init_projection_head_params(k_mol_p, molecule_dim, projection_dim),
    }

    # One-time: pad/stack parameters into kernel-ready layout and reuse.
    prepared = prepare_params([params["protein"], params["molecule"]])
    jax.block_until_ready(prepared)

    protein_features = jax.random.normal(k_prot_x, (batch, protein_dim), jnp.float32)
    molecule_features = jax.random.normal(k_mol_x, (batch, molecule_dim), jnp.float32)

    protein_proj, molecule_proj = contrastive_model_forward(
        prepared, protein_features, molecule_features)
    jax.block_until_ready((protein_proj, molecule_proj))

    # Pure-f32 reference check (kernel matmuls are bf16-in / f32-accumulate,
    # so compare with a tolerance appropriate for bf16 inputs).
    ref_p = _projection_head_ref(protein_features, params["protein"])
    ref_m = _projection_head_ref(molecule_features, params["molecule"])
    assert protein_proj.shape == (batch, projection_dim)
    assert molecule_proj.shape == (batch, projection_dim)
    assert jnp.allclose(protein_proj, ref_p, atol=5e-2, rtol=5e-2)
    assert jnp.allclose(molecule_proj, ref_m, atol=5e-2, rtol=5e-2)

    print("KERNEL_OK")
</pallas_src>

<mosaic_0001>
module attributes {stable_mosaic.version = 11 : i64} {
  func.func @_fused_heads_kernel(%arg0: i32, %arg1: memref<1x8x128xbf16, #tpu.memory_space<vmem>>, %arg2: memref<1x128x128xbf16, #tpu.memory_space<vmem>>, %arg3: memref<1x1x128xf32, #tpu.memory_space<vmem>>, %arg4: memref<1x1x128xf32, #tpu.memory_space<vmem>>, %arg5: memref<1x128x128xbf16, #tpu.memory_space<vmem>>, %arg6: memref<1x1x128xf32, #tpu.memory_space<vmem>>, %arg7: memref<1x8x128xf32, #tpu.memory_space<vmem>>) attributes {dimension_semantics = [#tpu.dimension_semantics<parallel>], iteration_bounds = array<i64: 2>, scalar_prefetch = 0 : i64, scratch_operands = 0 : i64, tpu.core_type = #tpu.core_type<tc>, window_params = [{transform_indices = @transform_0, window_bounds = array<i64: 1, 8, 128>}, {transform_indices = @transform_1, window_bounds = array<i64: 1, 128, 128>}, {transform_indices = @transform_2, window_bounds = array<i64: 1, 1, 128>}, {transform_indices = @transform_3, window_bounds = array<i64: 1, 1, 128>}, {transform_indices = @transform_4, window_bounds = array<i64: 1, 128, 128>}, {transform_indices = @transform_5, window_bounds = array<i64: 1, 1, 128>}, {transform_indices = @transform_6, window_bounds = array<i64: 1, 8, 128>}]} {
    %c0 = arith.constant 0 : index
    %c0_0 = arith.constant 0 : index
    %c0_1 = arith.constant 0 : index
    %0 = vector.load %arg1[%c0, %c0_0, %c0_1] : memref<1x8x128xbf16, #tpu.memory_space<vmem>>, vector<1x8x128xbf16>
    %1 = vector.shape_cast %0 : vector<1x8x128xbf16> to vector<8x128xbf16>
    %c0_2 = arith.constant 0 : index
    %c0_3 = arith.constant 0 : index
    %c0_4 = arith.constant 0 : index
    %2 = vector.load %arg2[%c0_2, %c0_3, %c0_4] : memref<1x128x128xbf16, #tpu.memory_space<vmem>>, vector<1x128x128xbf16>
    %3 = vector.shape_cast %2 : vector<1x128x128xbf16> to vector<128x128xbf16>
    %cst = arith.constant dense<0.000000e+00> : vector<8x128xf32>
    %4 = tpu.matmul %1, %3, %cst {dimension_numbers = #tpu.dot_dimension_numbers<[1], [0], [0], [1], [0, 0, 1, 1], [], []>} : vector<8x128xbf16>, vector<128x128xbf16>, vector<8x128xf32> -> vector<8x128xf32>
    %cst_5 = arith.constant dense<0.000000e+00> : vector<128xf32>
    %5 = vector.multi_reduction <add>, %4, %cst_5 [0] : vector<8x128xf32> to vector<128xf32>
    %6 = vector.shape_cast %5 : vector<128xf32> to vector<1x128xf32>
    %cst_6 = arith.constant 8.000000e+00 : f32
    %7 = vector.broadcast %cst_6 : f32 to vector<1x128xf32>
    %8 = arith.divf %6, %7 : vector<1x128xf32>
    %9 = vector.broadcast %8 : vector<1x128xf32> to vector<8x128xf32>
    %10 = arith.subf %4, %9 : vector<8x128xf32>
    %11 = arith.mulf %10, %10 : vector<8x128xf32>
    %cst_7 = arith.constant dense<0.000000e+00> : vector<128xf32>
    %12 = vector.multi_reduction <add>, %11, %cst_7 [0] : vector<8x128xf32> to vector<128xf32>
    %13 = vector.shape_cast %12 : vector<128xf32> to vector<1x128xf32>
    %cst_8 = arith.constant 8.000000e+00 : f32
    %14 = vector.broadcast %cst_8 : f32 to vector<1x128xf32>
    %15 = arith.divf %13, %14 : vector<1x128xf32>
    %c0_9 = arith.constant 0 : index
    %c0_10 = arith.constant 0 : index
    %c0_11 = arith.constant 0 : index
    %16 = vector.load %arg3[%c0_9, %c0_10, %c0_11] : memref<1x1x128xf32, #tpu.memory_space<vmem>>, vector<1x1x128xf32>
    %17 = vector.shape_cast %16 : vector<1x1x128xf32> to vector<1x128xf32>
    %cst_12 = arith.constant 9.99999974E-6 : f32
    %18 = vector.broadcast %cst_12 : f32 to vector<1x128xf32>
    %19 = arith.addf %15, %18 : vector<1x128xf32>
    %20 = math.rsqrt %19 : vector<1x128xf32>
    %21 = arith.mulf %17, %20 : vector<1x128xf32>
    %22 = vector.broadcast %21 : vector<1x128xf32> to vector<8x128xf32>
    %23 = arith.mulf %10, %22 : vector<8x128xf32>
    %c0_13 = arith.constant 0 : index
    %c0_14 = arith.constant 0 : index
    %c0_15 = arith.constant 0 : index
    %24 = vector.load %arg4[%c0_13, %c0_14, %c0_15] : memref<1x1x128xf32, #tpu.memory_space<vmem>>, vector<1x1x128xf32>
    %25 = vector.shape_cast %24 : vector<1x1x128xf32> to vector<1x128xf32>
    %26 = vector.broadcast %25 : vector<1x128xf32> to vector<8x128xf32>
    %27 = arith.addf %23, %26 : vector<8x128xf32>
    %cst_16 = arith.constant 0.000000e+00 : f32
    %28 = vector.broadcast %cst_16 : f32 to vector<8x128xf32>
    %29 = arith.maximumf %27, %28 : vector<8x128xf32>
    %30 = arith.truncf %29 : vector<8x128xf32> to vector<8x128xbf16>
    %c0_17 = arith.constant 0 : index
    %c0_18 = arith.constant 0 : index
    %c0_19 = arith.constant 0 : index
    %31 = vector.load %arg5[%c0_17, %c0_18, %c0_19] : memref<1x128x128xbf16, #tpu.memory_space<vmem>>, vector<1x128x128xbf16>
    %32 = vector.shape_cast %31 : vector<1x128x128xbf16> to vector<128x128xbf16>
    %cst_20 = arith.constant dense<0.000000e+00> : vector<8x128xf32>
    %33 = tpu.matmul %30, %32, %cst_20 {dimension_numbers = #tpu.dot_dimension_numbers<[1], [0], [0], [1], [0, 0, 1, 1], [], []>} : vector<8x128xbf16>, vector<128x128xbf16>, vector<8x128xf32> -> vector<8x128xf32>
    %c0_21 = arith.constant 0 : index
    %c0_22 = arith.constant 0 : index
    %c0_23 = arith.constant 0 : index
    %34 = vector.load %arg6[%c0_21, %c0_22, %c0_23] : memref<1x1x128xf32, #tpu.memory_space<vmem>>, vector<1x1x128xf32>
    %35 = vector.shape_cast %34 : vector<1x1x128xf32> to vector<1x128xf32>
    %36 = vector.broadcast %35 : vector<1x128xf32> to vector<8x128xf32>
    %37 = arith.addf %33, %36 : vector<8x128xf32>
    %c0_24 = arith.constant 0 : index
    %c0_25 = arith.constant 0 : index
    %c0_26 = arith.constant 0 : index
    %38 = vector.load %arg7[%c0_24, %c0_25, %c0_26] : memref<1x8x128xf32, #tpu.memory_space<vmem>>, vector<1x8x128xf32>
    %39 = vector.shape_cast %38 : vector<1x8x128xf32> to vector<8x128xf32>
    %40 = vector.shape_cast %37 : vector<8x128xf32> to vector<1x8x128xf32>
    tpu.vector_store %arg7[%c0_24, %c0_25, %c0_26], %40 {strides = array<i32>} : memref<1x8x128xf32, #tpu.memory_space<vmem>>, vector<1x8x128xf32>,
    return
  }
  func.func @transform_0(%arg0: i32) -> (i32, i32, i32) {
    %c0_i32 = arith.constant 0 : i32
    %c0_i32_0 = arith.constant 0 : i32
    %c0_i32_1 = arith.constant 0 : i32
    return %arg0, %c0_i32, %c0_i32_0 : i32, i32, i32
  }
  func.func @transform_1(%arg0: i32) -> (i32, i32, i32) {
    %c0_i32 = arith.constant 0 : i32
    %c0_i32_0 = arith.constant 0 : i32
    %c0_i32_1 = arith.constant 0 : i32
    return %arg0, %c0_i32, %c0_i32_0 : i32, i32, i32
  }
  func.func @transform_2(%arg0: i32) -> (i32, i32, i32) {
    %c0_i32 = arith.constant 0 : i32
    %c0_i32_0 = arith.constant 0 : i32
    %c0_i32_1 = arith.constant 0 : i32
    return %arg0, %c0_i32, %c0_i32_0 : i32, i32, i32
  }
  func.func @transform_3(%arg0: i32) -> (i32, i32, i32) {
    %c0_i32 = arith.constant 0 : i32
    %c0_i32_0 = arith.constant 0 : i32
    %c0_i32_1 = arith.constant 0 : i32
    return %arg0, %c0_i32, %c0_i32_0 : i32, i32, i32
  }
  func.func @transform_4(%arg0: i32) -> (i32, i32, i32) {
    %c0_i32 = arith.constant 0 : i32
    %c0_i32_0 = arith.constant 0 : i32
    %c0_i32_1 = arith.constant 0 : i32
    return %arg0, %c0_i32, %c0_i32_0 : i32, i32, i32
  }
  func.func @transform_5(%arg0: i32) -> (i32, i32, i32) {
    %c0_i32 = arith.constant 0 : i32
    %c0_i32_0 = arith.constant 0 : i32
    %c0_i32_1 = arith.constant 0 : i32
    return %arg0, %c0_i32, %c0_i32_0 : i32, i32, i32
  }
  func.func @transform_6(%arg0: i32) -> (i32, i32, i32) {
    %c0_i32 = arith.constant 0 : i32
    %c0_i32_0 = arith.constant 0 : i32
    %c0_i32_1 = arith.constant 0 : i32
    return %arg0, %c0_i32, %c0_i32_0 : i32, i32, i32
  }
}

</mosaic_0001>

<bundles_post_ra>
// kernel: tpu_custom_call.1
= control target key start
LH: loop header
LB: loop body
LE: loop exit
PB: predicated region body
PF: predicated region fallthrough
CT: control target
= control target key end

     0   :  { %s1436_s0 = inlined_call_operand.hbm [shape: bf16[2,8,128], index: 0, kind: input, shape index: {}]   ;;  %s1437_s1 = inlined_call_operand.hbm [shape: bf16[2,128,128], index: 1, kind: input, shape index: {}]   ;;  %s1438_s2 = inlined_call_operand.vmem [shape: f32[2,1,128], index: 2, kind: input, shape index: {}]   ;;  %s1439_s3 = inlined_call_operand.vmem [shape: f32[2,1,128], index: 3, kind: input, shape index: {}]   ;;  %s1440_s4 = inlined_call_operand.hbm [shape: bf16[2,128,128], index: 4, kind: input, shape index: {}]   ;;  %s1441_s5 = inlined_call_operand.vmem [shape: f32[2,1,128], index: 5, kind: input, shape index: {}]   ;;  %s1442_s6 = inlined_call_operand.hbm [shape: f32[2,8,128], index: 6, kind: output, shape index: {}]  }
   0x1   :  { %1454 = sst [smem:[#allocation16_spill]] %s1437_s1 }
   0x2   :  { %11 = vsyncpa [#allocation3], 0 }
   0x3   :  { %13 = vsyncpa [#allocation3 + $0x1], 0 }
   0x4   :  { %14 = vsyncpa [#allocation6], 0 }
   0x5   :  { %16 = vsyncpa [#allocation6 + $0x1], 0 }
   0x6   :  { %17 = vsyncpa [#allocation4], 0 }
   0x7   :  { %19 = vsyncpa [#allocation4 + $0x1], 0  ;;  %s1177_s21 = smov 0   ;;  %s1179_s22 = smov 0  }
   0x8   :  { %s1181_s23 = smov 0   ;;  %s1183_s24 = smov 0  }
   0x9 LB: > { %1455 = sst [smem:[#allocation12_spill]] %s1128_s23  ;;  %s1198_s25 = sadd.s32 4294967295, %s1132_s24   ;;  %s1132_s24 = sphi %s1183_s24, %s1476_s24   ;;  %s1128_s23 = sphi %s1181_s23, %s1478_s23   ;;  %s1124_s22 = sphi %s1179_s22, %s1480_s22   ;;  %s1120_s21 = sphi %s1177_s21, %s1479_s21  }
   0xa   : > { %1456 = sst [smem:[#allocation13_spill]] %s1132_s24  ;;  %s796_s26 = sadd.s32 4294967294, %s1132_s24  }
   0xb   : > { %s1202_s27 = sadd.s32 1, %s1132_s24   ;;  %s32_s28 = sadd.s32 1, %s1128_s23 }
   0xc   : > { %1457 = sst [smem:[#allocation14_spill]] %s1202_s27  ;;  %s29_s29 = ssub.s32 %s1132_s24, %s1202_s27 }
   0xd   : > { %p39_p0 = scmp.ne.s32.totalorder %s1128_s23, %s1124_s22  ;;  %p30_p1 = scmp.eq.s32.totalorder %s29_s29, 0 }
   0xe   : > { %p40_p2 = scmp.eq.s32.totalorder %s1132_s24, 0  ;;  %p45_p3 = scmp.ne.s32.totalorder %s1124_s22, %s1120_s21 }
   0xf   : > { %p46_p4 = scmp.eq.s32.totalorder %s1198_s25, 0  ;;  %p199_p7 = scmp.eq.s32.totalorder %s1198_s25, 1 }
  0x10   : > { %s1214_s30 = scalar_select %p30_p1, %s1128_s23, %s32_s28  }
  0x11   : > { %p41_p5 = por %p40_p2, %p39_p0  ;;  %p1216_p6 = por %p46_p4, %p45_p3 }
  0x12   : > { %1458 = sst [smem:[#allocation15_spill]] %s1214_s30  ;;  %p205_p8 = scmp.eq.s32.totalorder %s796_s26, 1 }
  0x13   : > { %s1459_s7 = scalar_select %p1216_p6, 1, 0 }
  0x14   : > { %p916_p10 = scmp.lt.s32.totalorder %s1132_s24, 2  ;;  %p1223_p11 = por %p199_p7, %p39_p0 }
  0x15   : > { %p1227_p12 = por %p205_p8, %p45_p3  ;;  %s1232_s10 = sand.u32 1, %s1128_s23  }
  0x16   : > { %s1460_s8 = scalar_select %p1223_p11, 1, 0 }
  0x17   : > { %s1461_s9 = scalar_select %p1227_p12, 1, 0 }
  0x18   : > { %p1234_p13 = pnand %p916_p10, %p41_p5  ;;  %s243_s12 = sand.u32 1, %s1132_s24  }
  0x19   : > { %s1443_s13 = sshll.u32 %s1232_s10, 6  ;;  %s834_s14 = sshll.u32 %s1132_s24, 10 }
  0x1a   : > { %s1462_s11 = scalar_select %p1234_p13, 1, 0 }
  0x1b   : > { %s1463_s1 = sld [smem:[#allocation16_spill]]  ;;  %s247_s18 = scalar_lea.vmem [#allocation5], %s1443_s13 }
  0x1c   : > { %s254_s19 = sshll.u32 %s247_s18, 4  ;;  %s1252_s20 = scalar_lea.sflag [#allocation6], %s243_s12  ;;  %s1250_s19 = int_to_ptr.vmem [resolvable:$true] %s254_s19 }
  0x1d   : > { %p1258_p1 = pneg %p1234_p13 }
  0x21   : > { %s1246_s17 = scalar_lea.hbm %s1463_s1, %s834_s14  ;;  %s977_s16 = scalar_lea.hbm %s1463_s1, 2048 }
  0x22   : > { %s972_s26 = scalar_lea.hbm %s1246_s17, 1024  ;;  %p978_p4 = scmp.lt.u32.totalorder %s1246_s17, %s1463_s1 }
  0x23   : > { %p973_p0 = scmp.ne.s32.totalorder %s1246_s17, %s972_s26  ;;  %p979_p5 = scmp.lt.u32.totalorder %s977_s16, %s972_s26 }
  0x24   : > { %p981_p8 = scmp.lt.u32.totalorder %s972_s26, %s1246_s17 }
  0x25   : > { %p975_p2 = pnand %p1258_p1, %p973_p0  ;;  %p980_p7 = por %p979_p5, %p978_p4 }
  0x27   : > { %p976_p3 = pneg %p975_p2  ;;  %p982_p10 = por %p981_p8, %p980_p7 }
  0x29   : > { %p983_p9 = pnand %p982_p10, %p976_p3 }
  0x2b   : > { %986 = shalt.err (!%p983_p9)
}
  0x2c   : > { %s987_s12 = scalar_lea.vmem %s1250_s19, 1024  ;;  %s1134_s29 = smov [#allocation5]  }
  0x2d   : > { %p988_p0 = scmp.ne.s32.totalorder %s1250_s19, %s987_s12  ;;  %s992_s15 = sshll.u32 %s1134_s29, 4  ;;  %s993_s15 = int_to_ptr.vmem [resolvable:$false] %s992_s15 }
  0x2e   : > { %s994_s13 = scalar_lea.vmem %s993_s15, 2048  ;;  %p995_p11 = scmp.lt.s32.totalorder %s1250_s19, %s993_s15 }
  0x2f   : > { %p990_p2 = pnand %p988_p0, %p1258_p1  ;;  %p996_p6 = scmp.lt.s32.totalorder %s994_s13, %s987_s12 }
  0x31   : > { %p991_p12 = pneg %p990_p2  ;;  %p997_p4 = por %p996_p6, %p995_p11 }
  0x33   : > { %p998_p5 = pnand %p997_p4, %p991_p12 }
  0x35   : > { %1001 = shalt.err (!%p998_p5)
}
  0x36   : > { %s1449_s26 = smov 64   ;;  %s1450_s16 = smov 4  }
  0x37   : > { %908 = dma.hbm_to_vmem [thread:$0]  (!%p1234_p13), %s1246_s17, 1024, %s1250_s19, %s1252_s20, %s1449_s26, %s1449_s26, %s1450_s16  }
  0x38   : > { %s1290_s29 = scalar_lea.hbm %s1440_s4, %s834_s14  ;;  %s1465_s15 = sshll.u32 %s1232_s10, 6 }
  0x39   : > { %s280_s13 = scalar_lea.vmem [#allocation7], %s1465_s15  ;;  %p807_p6 = scmp.ge.s32.totalorder %s1132_s24, 1 }
  0x3a   : > { %s287_s1 = sshll.u32 %s280_s13, 4  ;;  %p301_p9 = scmp.lt.s32.totalorder %s1132_s24, 3  ;;  %s1294_s1 = int_to_ptr.vmem [resolvable:$true] %s287_s1 }
  0x3b   : > { %s799_s30 = sshll.u32 %s1232_s10, 2  ;;  %s800_s23 = sshll.u32 %s1132_s24, 6 }
  0x3c   : > { %p1300_p11 = pnand %p807_p6, %p301_p9  ;;  %s1307_s18 = scalar_lea.hbm %s1436_s0, %s800_s23 }
  0x3d   : > { %s229_s14 = scalar_lea.vmem [#allocation2], %s799_s30  ;;  %s226_s15 = scalar_lea.sflag [#allocation3], %s1232_s10 }
  0x3e   : > { %s1466_s27 = scalar_select %p1300_p11, 1, 0 }
  0x3f   : > { %s236_s12 = sshll.u32 %s229_s14, 4  ;;  %s1002_s13 = scalar_lea.hbm %s1307_s18, 64  ;;  %s237_s12 = int_to_ptr.vmem [resolvable:$true] %s236_s12 }
  0x40   : > { %p1003_p12 = scmp.ne.s32.totalorder %s1307_s18, %s1002_s13  ;;  %s1007_s24 = scalar_lea.hbm %s1436_s0, 128 }
  0x41   : > { %p1008_p8 = scmp.lt.u32.totalorder %s1307_s18, %s1436_s0  ;;  %p1009_p10 = scmp.lt.u32.totalorder %s1007_s24, %s1002_s13 }
  0x42   : > { %p1005_p3 = pnand %p1003_p12, %p1258_p1  ;;  %p1011_p2 = scmp.lt.u32.totalorder %s1002_s13, %s1307_s18 }
  0x43   : > { %p1010_p0 = por %p1009_p10, %p1008_p8 }
  0x44   : > { %p1006_p7 = pneg %p1005_p3 }
  0x45   : > { %p1012_p4 = por %p1011_p2, %p1010_p0 }
  0x47   : > { %p1013_p5 = pnand %p1012_p4, %p1006_p7 }
  0x49   : > { %1016 = shalt.err (!%p1013_p5)
}
  0x4a   : > { %s1017_s30 = scalar_lea.vmem %s237_s12, 64  ;;  %s1137_s10 = smov [#allocation2]  }
  0x4b   : > { %p1018_p6 = scmp.ne.s32.totalorder %s237_s12, %s1017_s30  ;;  %s1022_s19 = sshll.u32 %s1137_s10, 4  ;;  %s1023_s19 = int_to_ptr.vmem [resolvable:$false] %s1022_s19 }
  0x4c   : > { %s1024_s26 = scalar_lea.vmem %s1023_s19, 128  ;;  %p1025_p3 = scmp.lt.s32.totalorder %s237_s12, %s1023_s19 }
  0x4d   : > { %p1020_p9 = pnand %p1018_p6, %p1258_p1  ;;  %p1026_p11 = scmp.lt.s32.totalorder %s1024_s26, %s1017_s30 }
  0x4f   : > { %p1021_p12 = pneg %p1020_p9  ;;  %p1027_p13 = por %p1026_p11, %p1025_p3 }
  0x51   : > { %p1028_p8 = pnand %p1027_p13, %p1021_p12 }
  0x53   : > { %1031 = shalt.err (!%p1028_p8)
}
  0x54   : > { %p1467_p10 = scmp.ne.s32.totalorder %s1462_s11, 0  ;;  %s1032_s24 = scalar_lea.hbm %s1290_s29, 1024 }
  0x55   : > { %p1033_p7 = scmp.ne.s32.totalorder %s1290_s29, %s1032_s24  ;;  %s1037_s13 = scalar_lea.hbm %s1440_s4, 2048 }
  0x56   : > { %905 = dma.hbm_to_vmem [thread:$0]  (!%p1467_p10), %s1307_s18, 64, %s237_s12, %s226_s15  }
  0x57   : > { %p1035_p0 = pnand %p1033_p7, %p1258_p1  ;;  %p1038_p13 = scmp.lt.u32.totalorder %s1290_s29, %s1440_s4 }
  0x58   : > { %p1039_p11 = scmp.lt.u32.totalorder %s1037_s13, %s1032_s24  ;;  %p1041_p5 = scmp.lt.u32.totalorder %s1032_s24, %s1290_s29 }
  0x59   : > { %p1036_p2 = pneg %p1035_p0 }
  0x5a   : > { %p1040_p4 = por %p1039_p11, %p1038_p13 }
  0x5c   : > { %p1042_p6 = por %p1041_p5, %p1040_p4 }
  0x5e   : > { %p1043_p9 = pnand %p1042_p6, %p1036_p2 }
  0x60   : > { %1046 = shalt.err (!%p1043_p9)
}
  0x61   : > { %s1047_s18 = scalar_lea.vmem %s1294_s1, 1024  ;;  %s1138_s12 = smov [#allocation7]  }
  0x62   : > { %p1048_p12 = scmp.ne.s32.totalorder %s1294_s1, %s1047_s18  ;;  %s1052_s15 = sshll.u32 %s1138_s12, 4  ;;  %s1053_s15 = int_to_ptr.vmem [resolvable:$false] %s1052_s15 }
  0x63   : > { %s1054_s30 = scalar_lea.vmem %s1053_s15, 2048  ;;  %p1055_p7 = scmp.lt.s32.totalorder %s1294_s1, %s1053_s15 }
  0x64   : > { %p1050_p3 = pnand %p1048_p12, %p1258_p1  ;;  %p1056_p0 = scmp.lt.s32.totalorder %s1054_s30, %s1047_s18 }
  0x66   : > { %p1051_p8 = pneg %p1050_p3  ;;  %p1057_p13 = por %p1056_p0, %p1055_p7 }
  0x68   : > { %p1058_p11 = pnand %p1057_p13, %p1051_p8 }
  0x6a   : > { %1061 = shalt.err (!%p1058_p11)
}
  0x6b   : > { %s1468_s10 = smov 4   ;;  %s1469_s19 = smov 64  }
  0x6c   : > { %911 = dma.hbm_to_vmem [thread:$0]  (!%p1467_p10), %s1290_s29, 1024, %s1294_s1, %s1252_s20, %s1469_s19, %s1469_s19, %s1468_s10  }
  0x6d   : > { %p1470_p1 = scmp.ne.s32.totalorder %s1466_s27, 0 }
  0x6e   : > { %s1355_s28 = sand.u32 (!%p1470_p1), 1, %s1124_s22   ;;  %p1471_p2 = scmp.ne.s32.totalorder (!%p1470_p1), %s1459_s7, 0 }
  0x6f   : > { %305 = sbr.rel (%p1470_p1) target bundleno = 653 (0x28d), region = 44  ;;  %s808_s26 = sshll.u32 (!%p1470_p1), %s1355_s28, 2 }
  0x70   : > { %s308_s24 = scalar_lea.sflag (!%p1470_p1), [#allocation3], %s1355_s28  ;;  %s1359_s16 = scalar_lea.vmem (!%p1470_p1), [#allocation2], %s808_s26 }
  0x76   : > { %1107 = dma.done.wait (%p1471_p2), %s308_s24, 64  }
  0x77   : > { %1109 = vsyncadd (%p1471_p2), %s308_s24, 4294967232  ;;  %s316_s1 = sand.u32 1, %s1198_s25   ;;  %s809_s27 = sshll.u32 %s1355_s28, 6 }
  0x78   : > { %s317_s11 = scalar_lea.sflag [#allocation6], %s316_s1  ;;  %s320_s20 = scalar_lea.vmem [#allocation5], %s809_s27 }
  0x79   : > { %1111 = dma.done.wait (%p1471_p2), %s317_s11, 2048  }
  0x7a   : > { %1113 = vsyncadd (%p1471_p2), %s317_s11, 4294965248  ;;  %v1139_v0 = vmov 0.0   ;;  %vm1140_vm0 = vmmov 0   ;;  %v954_v1 = vld [vmem:[%s320_s20] sm:$0xff]   ;;  %v955_v2 = vld [vmem:[%s320_s20 + $0x8] sm:$0xff]   ;;  %s329_s7 = scalar_lea.vmem [#allocation7], %s809_s27  ;;  %v514_v39 = vlaneseq }
  0x7b   : > { %854 = vmatprep.subr.bf16.mxu0 %v1139_v0  ;;  %870 = vmatprep.mubr.msk.bf16.mxu0 %vm1140_vm0, %v1139_v0  ;;  %v956_v3 = vld [vmem:[%s320_s20 + $0x10] sm:$0xff]   ;;  %v957_v4 = vld [vmem:[%s320_s20 + $0x18] sm:$0xff]   ;;  %v958_v5 = vld [vmem:[%s320_s20 + $0x20] sm:$0xff]   ;;  %p377_p10 = scmp.lt.s32.totalorder %s1198_s25, 1  ;;  %s811_s15 = sshll.u32 %s1355_s28, 3 }
  0x7c   : > { %874 = vmatprep.subr.bf16.mxu1 %v1139_v0  ;;  %890 = vmatprep.mubr.msk.bf16.mxu1 %vm1140_vm0, %v1139_v0  ;;  %v959_v6 = vld [vmem:[%s320_s20 + $0x28] sm:$0xff]   ;;  %v960_v7 = vld [vmem:[%s320_s20 + $0x30] sm:$0xff]   ;;  %v961_v8 = vld [vmem:[%s320_s20 + $0x38] sm:$0xff]   ;;  %v515_v40 = vshrl.u32 %v514_v39, 7  ;;  %s831_s26 = sshll.u32 %s1198_s25, 7  ;;  %s376_s24 = scalar_lea.vmem [#allocation8], %s811_s15 }
  0x7d   : > { %855 = vmatpush3.bf16.msra.mxu0 %v954_v1  ;;  %v387_v9 = vld [vmem:[%s1359_s16] sm:$0xf]  ;;  %v962_v10 = vld [vmem:[%s329_s7] sm:$0xff]   ;;  %v963_v11 = vld [vmem:[%s329_s7 + $0x8] sm:$0xff]   ;;  %s378_s29 = scalar_select %p377_p10, %s1198_s25, 1 }
  0x7e   : > { %856 = vmatprep.subr.bf16.mxu0 %v1139_v0  ;;  %875 = vmatpush3.bf16.msra.mxu1 %v962_v10  ;;  %v964_v12 = vld [vmem:[%s329_s7 + $0x10] sm:$0xff]   ;;  %v965_v13 = vld [vmem:[%s329_s7 + $0x18] sm:$0xff]   ;;  %v966_v14 = vld [vmem:[%s329_s7 + $0x20] sm:$0xff]   ;;  %v516_v42 = vsub.s32 0, %v515_v40  ;;  %s656_s16 = sshll.u32 %s376_s24, 4  ;;  %s1392_s11 = scalar_lea.hbm %s1442_s6, %s831_s26  ;;  %s1394_s16 = int_to_ptr.vmem [resolvable:$true] %s656_s16 }
  0x7f   : > { %876 = vmatprep.subr.bf16.mxu1 %v1139_v0  ;;  %v967_v15 = vld [vmem:[%s329_s7 + $0x28] sm:$0xff]   ;;  %v968_v16 = vld [vmem:[%s329_s7 + $0x30] sm:$0xff]   ;;  %v969_v17 = vld [vmem:[%s329_s7 + $0x38] sm:$0xff]   ;;  %s379_s17 = scalar_lea.vmem %s1438_s2, %s378_s29  ;;  %s382_s12 = scalar_lea.vmem %s1439_s3, %s378_s29 }
  0x80   : > { %v509_v41 = vld [vmem:[%s379_s17] sm:$0x1]  ;;  %s385_s19 = scalar_lea.vmem %s1441_s5, %s378_s29  ;;  %s643_s20 = scalar_lea.sflag [#allocation4], %s1355_s28 }
  0x81   : > { %857 = vmatpush3.bf16.msra.mxu0 %v955_v2  ;;  %v820_v46 = vld [vmem:[%s382_s12] ss:$0 sm:$0xff]  ;;  %s1062_s25 = scalar_lea.vmem %s1394_s16, 128  ;;  %p1472_p5 = scmp.ne.s32.totalorder %s1460_s8, 0 }
  0x82   : > { %858 = vmatprep.subr.bf16.mxu0 %v1139_v0  ;;  %877 = vmatpush3.bf16.msra.mxu1 %v963_v11  ;;  %v821_v51 = vld [vmem:[%s385_s19] ss:$0 sm:$0xff]  ;;  %p1063_p4 = scmp.ne.s32.totalorder %s1394_s16, %s1062_s25  ;;  %s1141_s7 = smov [#allocation8]  }
  0x83   : > { %878 = vmatprep.subr.bf16.mxu1 %v1139_v0  ;;  %s1066_s29 = sshll.u32 %s1141_s7, 4  ;;  %s1067_s29 = int_to_ptr.vmem [resolvable:$false] %s1066_s29 }
  0x84   : > { %p1064_p6 = pnand %p1063_p4, %p1472_p5  ;;  %s1068_s14 = scalar_lea.vmem %s1067_s29, 256 }
  0x85   : > { %859 = vmatpush3.bf16.msra.mxu0 %v956_v3  ;;  %p1069_p12 = scmp.lt.s32.totalorder %s1394_s16, %s1067_s29  ;;  %p1070_p3 = scmp.lt.s32.totalorder %s1068_s14, %s1062_s25 }
  0x86   : > { %860 = vmatprep.subr.bf16.mxu0 %v1139_v0  ;;  %879 = vmatpush3.bf16.msra.mxu1 %v964_v12  ;;  %p1065_p9 = pneg %p1064_p6 }
  0x87   : > { %880 = vmatprep.subr.bf16.mxu1 %v1139_v0  ;;  %p1071_p8 = por %p1070_p3, %p1069_p12 }
  0x89   : > { %861 = vmatpush3.bf16.msra.mxu0 %v957_v4  ;;  %p1072_p7 = pnand %p1071_p8, %p1065_p9 }
  0x8a   : > { %862 = vmatprep.subr.bf16.mxu0 %v1139_v0  ;;  %881 = vmatpush3.bf16.msra.mxu1 %v965_v13 }
  0x8b   : > { %882 = vmatprep.subr.bf16.mxu1 %v1139_v0 }
  0x8d   : > { %863 = vmatpush3.bf16.msra.mxu0 %v958_v5 }
  0x8e   : > { %864 = vmatprep.subr.bf16.mxu0 %v1139_v0  ;;  %883 = vmatpush3.bf16.msra.mxu1 %v966_v14 }
  0x8f   : > { %884 = vmatprep.subr.bf16.mxu1 %v1139_v0 }
  0x91   : > { %865 = vmatpush3.bf16.msra.mxu0 %v959_v6 }
  0x92   : > { %866 = vmatprep.subr.bf16.mxu0 %v1139_v0  ;;  %885 = vmatpush3.bf16.msra.mxu1 %v967_v15 }
  0x93   : > { %886 = vmatprep.subr.bf16.mxu1 %v1139_v0 }
  0x95   : > { %867 = vmatpush3.bf16.msra.mxu0 %v960_v7 }
  0x96   : > { %868 = vmatprep.subr.bf16.mxu0 %v1139_v0  ;;  %887 = vmatpush3.bf16.msra.mxu1 %v968_v16 }
  0x97   : > { %888 = vmatprep.subr.bf16.mxu1 %v1139_v0 }
  0x99   : > { %869 = vmatpush3.bf16.msra.mxu0 %v961_v8 }
  0x9a   : > { %889 = vmatpush3.bf16.msra.mxu1 %v969_v17 }
  0x9c   : > { %871 = vmatmul.mubr.bf16.vlgmr.msra.gmra.mrb[0].mxu0 %v387_v9 }
 0x16f   : > { %v486_v18 = vpop.f32.mrb[0].mxu0 }
 0x170   : > { %v492_v19 = vrot.slane %v486_v18, 4  ;;  %v872_v20 = vpop.f32.mrb[1].mxu0 }
 0x171   : > { %v489_v21 = vpop.f32.mrb[2].mxu0 }
 0x172   : > { %v493_v22 = vadd.f32 %v492_v19, %v486_v18  ;;  %v873_v23 = vpop.f32.mrb[3].mxu0 }
 0x174   : > { %v494_v24 = vrot.slane %v493_v22, 2 }
 0x176   : > { %v495_v25 = vadd.f32 %v494_v24, %v493_v22 }
 0x178   : > { %v496_v26 = vrot.slane %v495_v25, 1 }
 0x17a   : > { %v497_v27 = vadd.f32 %v496_v26, %v495_v25 }
 0x17c   : > { %v499_v28 = vmul.f32 0.125, %v497_v27 }
 0x17e   : > { %v500_v29 = vsub.f32 %v486_v18, %v499_v28 }
 0x180   : > { %v501_v30 = vmul.f32 %v500_v29, %v500_v29 }
 0x182   : > { %v502_v31 = vrot.slane %v501_v30, 4 }
 0x184   : > { %v503_v32 = vadd.f32 %v502_v31, %v501_v30 }
 0x186   : > { %v504_v33 = vrot.slane %v503_v32, 2 }
 0x188   : > { %v505_v34 = vadd.f32 %v504_v33, %v503_v32 }
 0x18a   : > { %v506_v35 = vrot.slane %v505_v34, 1 }
 0x18c   : > { %v507_v36 = vadd.f32 %v506_v35, %v505_v34 }
 0x18e   : > { %v508_v37 = vmul.f32 0.125, %v507_v36 }
 0x190   : > { %v510_v38 = vadd.f32 1e-05, %v508_v37 }
 0x192   : > { %970 = vrsqrt.f32 %v510_v38 }
 0x19c   : > { %v971_v43 = vpop.eup %970 }
 0x19d   : > { %v512_v44 = vmul.f32 %v971_v43, %v509_v41 }
 0x19f   : > { %v517_v45 = vrot.slane %v512_v44, %v516_v42 }
 0x1a1   : > { %v519_v47 = vmul.f32 %v517_v45, %v500_v29 }
 0x1a3   : > { %v527_v48 = vadd.f32 %v820_v46, %v519_v47 }
 0x1a5   : > { %v528_v49 = vmax.f32 %v527_v48, 0.0 }
 0x1a7   : > { %v529_v50 = vpack.c.bf16 %v528_v49, %v528_v49 }
 0x1a9   : > { %891 = vmatmul.mubr.bf16.vlgmr.msra.gmra.mrb[0].mxu1 %v529_v50 }
 0x27c   : > { %v635_v52 = vpop.f32.mrb[0].mxu1 }
 0x27d   : > { %v636_v53 = vadd.f32 %v821_v51, %v635_v52  ;;  %v892_v54 = vpop.f32.mrb[1].mxu1 }
 0x27e   : > { %v638_v55 = vpop.f32.mrb[2].mxu1 }
 0x27f   : > { %641 = vst [vmem:[%s376_s24] sm:$0xff] %v636_v53  ;;  %v893_v56 = vpop.f32.mrb[3].mxu1 }
 0x280   : > { %1075 = shalt.err (!%p1072_p7)
}
 0x281   : > { %s1076_s28 = scalar_lea.hbm %s1392_s11, 128  ;;  %s1080_s23 = scalar_lea.hbm %s1442_s6, 256 }
 0x282   : > { %p1077_p0 = scmp.ne.s32.totalorder %s1392_s11, %s1076_s28  ;;  %p1081_p1 = scmp.lt.u32.totalorder %s1392_s11, %s1442_s6 }
 0x283   : > { %p1082_p2 = scmp.lt.u32.totalorder %s1080_s23, %s1076_s28  ;;  %p1084_p4 = scmp.lt.u32.totalorder %s1076_s28, %s1392_s11 }
 0x284   : > { %p1078_p13 = pnand %p1077_p0, %p1472_p5 }
 0x285   : > { %p1083_p10 = por %p1082_p2, %p1081_p1 }
 0x286   : > { %p1079_p11 = pneg %p1078_p13 }
 0x287   : > { %p1085_p6 = por %p1084_p4, %p1083_p10 }
 0x289   : > { %p1086_p9 = pnand %p1085_p6, %p1079_p11 }
 0x28b   : > { %1089 = shalt.err (!%p1086_p9)
}
 0x28c   : > { %900 = dma.vmem_to_hbm [thread:$0]  (%p1472_p5), %s1394_s16, 128, %s1392_s11, %s643_s20  }
 0x28d PF: > { %s1473_s15 = sld [smem:[#allocation13_spill]]  ;;  %s668_s30 = sand.u32 1, %s1120_s21  }
 0x28e   : > { %p1474_p12 = scmp.ne.s32.totalorder %s1461_s9, 0  ;;  %s669_s10 = scalar_lea.sflag [#allocation4], %s668_s30 }
 0x293   : > { %p1475_p3 = scmp.ge.s32.totalorder %s1473_s15, 2 }
 0x295   : > { %p913_p8 = pnand %p1475_p3, %p1474_p12 }
 0x297   : > { %1115 = dma.done.wait (!%p913_p8), %s669_s10, 128  }
 0x298   : > { %1117 = vsyncadd (!%p913_p8), %s669_s10, 4294967168  ;;  %s1476_s24 = sld [smem:[#allocation14_spill]]  ;;  %s1477_s19 = sld [smem:[#allocation12_spill]] }
 0x299   : > { %s1478_s23 = sld [smem:[#allocation15_spill]]  ;;  %s1479_s21 = smov %s1124_s22 }
 0x29e   : > { %p22_p7 = scmp.ge.s32.totalorder %s1476_s24, 4   ;;  %s1480_s22 = smov %s1477_s19 }
 0x2a0   :  { %24 = sbr.rel (!%p22_p7) target bundleno = 9 (0x9), region = 122 }
 0x2a7   :  { %674 = vsyncpa [#allocation3], 1 }
 0x2a8   :  { %676 = vsyncpa [#allocation3 + $0x1], 1 }
 0x2a9   :  { %677 = vsyncpa [#allocation6], 1 }
 0x2aa   :  { %679 = vsyncpa [#allocation6 + $0x1], 1 }
 0x2ab   :  { %680 = vsyncpa [#allocation4], 1 }
 0x2ac   :  { %682 = vsyncpa [#allocation4 + $0x1], 1 }

</bundles_post_ra>
